<compile_context>
chip_gen: v6e
topology: v6e:2x2x1
jax: 0.10.0
libtpu: 0.0.40
codegen_flags: <defaults>
</compile_context>

<pallas_src>
import jax
import jax.numpy as jnp
from jax.experimental import pallas as pl
from jax.experimental.pallas import tpu as pltpu

BN_EPS = 1e-5
_LANE = 128


# ------------------------------ helpers --------------------------------------

def _round_up(x, m):
    return ((x + m - 1) // m) * m


def _pick_m_tile(M, prefer_split=True):
    """Batch tile minimizing pad waste (tie -> larger tile); halve it if it would
    yield a single grid step so v7x megacore can shard the parallel axis."""
    best_t, best_mp = None, None
    for t in (256, 128, 64, 32, 16):          # multiples of 16 -> bf16-safe sublane tiling
        mp = _round_up(M, t)
        if best_mp is None or mp < best_mp:
            best_t, best_mp = t, mp
    if prefer_split and best_mp // best_t == 1 and best_t >= 32:
        best_t //= 2
    return best_t, best_mp


def _largest_tile(dim, candidates):
    for c in candidates:
        if dim % c == 0:
            return c
    raise ValueError(f"dimension {dim} is not a multiple of 128")


def _vmem_limit(need_bytes):
    # Explicit scoped-VMEM request: >= 32 MiB (covers v5e's 16 MiB default),
    # capped at 48 MiB (safe under v7x's 64 MiB physical VMEM).
    return int(min(max(need_bytes + (8 << 20), 32 << 20), 48 << 20))


# --------------------- tiled per-layer kernel (large-H fallback) --------------

def _make_linear_act_kernel(activation, fuse_mul, single_k):
    """acc (+)= x @ wt (bf16 MXU, f32 accumulate); last K step: act(acc + b) [* other] -> out."""

    def kernel(*refs):
        if fuse_mul:
            x_ref, wt_ref, b_ref, m_ref, o_ref = refs[:5]
        else:
            x_ref, wt_ref, b_ref, o_ref = refs[:4]
            m_ref = None
        acc_ref = None if single_k else refs[-1]

        def epilogue(y):
            y = y + b_ref[...]
            if activation == "relu":
                y = jnp.maximum(y, 0.0)
            elif activation == "sigmoid":
                y = jax.nn.sigmoid(y)
            if fuse_mul:
                y = y * m_ref[...].astype(jnp.float32)
            o_ref[...] = y.astype(o_ref.dtype)

        d = jnp.dot(x_ref[...].astype(jnp.bfloat16), wt_ref[...],
                    preferred_element_type=jnp.float32)

        if single_k:
            epilogue(d)
        else:
            k = pl.program_id(2)

            @pl.when(k == 0)
            def _():
                acc_ref[...] = d            # direct write: no zero-init RMW

            @pl.when(k > 0)
            def _():
                acc_ref[...] += d

            @pl.when(k == pl.num_programs(2) - 1)
            def _():
                epilogue(acc_ref[...])

    return kernel


def linear_act(x, wt, bias, *, activation="none", mul_with=None, tm, out_dtype):
    """y = act(x @ wt + bias) [* mul_with], tiled over (M, N, K).

    x: (Mp, K) with Mp % tm == 0; wt: (K, N) bf16 with K, N multiples of 128;
    bias: (1, N) f32. Returns (Mp, N) in out_dtype (padded rows/cols included).
    """
    Mp, K = x.shape
    Kw, N = wt.shape
    assert K == Kw and Mp % tm == 0 and N % _LANE == 0 and K % _LANE == 0

    tn = _largest_tile(N, (512, 256, 128))
    tk = _largest_tile(K, (1024, 512, 256, 128))
    grid = (Mp // tm, N // tn, K // tk)
    single_k = grid[2] == 1
    fuse_mul = mul_with is not None

    x_bytes = jnp.dtype(x.dtype).itemsize
    w_bytes = jnp.dtype(wt.dtype).itemsize
    out_bytes = jnp.dtype(out_dtype).itemsize

    # Deepen the weight pipeline only when it is actually streamed across many K steps.
    wt_kwargs = {"pipeline_mode": pl.Buffered(3)} if grid[2] >= 3 else {}
    n_wbuf = 3 if grid[2] >= 3 else 2

    in_specs = [
        pl.BlockSpec((tm, tk), lambda i, j, k: (i, k)),               # x
        pl.BlockSpec((tk, tn), lambda i, j, k: (k, j), **wt_kwargs),  # weight (bf16)
        pl.BlockSpec((1, tn), lambda i, j, k: (0, j)),                # bias (f32)
    ]
    args = [x, wt, bias]
    if fuse_mul:
        in_specs.append(pl.BlockSpec((tm, tn), lambda i, j, k: (i, j)))
        args.append(mul_with)

    # Truthful traffic: x is re-read once per N tile, wt once per M tile.
    cost = pl.CostEstimate(
        flops=2 * Mp * K * N,
        transcendentals=(Mp * N) if activation == "sigmoid" else 0,
        bytes_accessed=int(
            Mp * K * x_bytes * grid[1]
            + K * N * w_bytes * grid[0]
            + N * 4 * grid[0]
            + (Mp * N * 4 if fuse_mul else 0)
            + Mp * N * out_bytes
        ),
    )

    need = (2 * tm * tk * x_bytes + n_wbuf * tk * tn * w_bytes + 2 * tn * 4
            + (2 * tm * tn * 4 if fuse_mul else 0) + 2 * tm * tn * out_bytes
            + (0 if single_k else tm * tn * 4))

    return pl.pallas_call(
        _make_linear_act_kernel(activation, fuse_mul, single_k),
        out_shape=jax.ShapeDtypeStruct((Mp, N), out_dtype),
        grid_spec=pltpu.PrefetchScalarGridSpec(
            num_scalar_prefetch=0,
            grid=grid,
            in_specs=in_specs,
            out_specs=pl.BlockSpec((tm, tn), lambda i, j, k: (i, j)),
            scratch_shapes=[] if single_k else [pltpu.VMEM((tm, tn), jnp.float32)],
        ),
        compiler_params=pltpu.CompilerParams(
            dimension_semantics=("parallel", "parallel", "arbitrary"),
            vmem_limit_bytes=_vmem_limit(need),
        ),
        cost_estimate=cost,
    )(*args)


# ---------------------- fully-fused joint-embedder kernel --------------------

def _make_fused_kernel(layers_per_tower):
    """Whole JointContentEmbedder in one kernel: each tower's MLP runs layer-by-layer on a
    VMEM-resident (tm x dim) activation (bf16 matmul inputs, f32 accumulation/epilogue);
    the final sigmoid(s) and the elementwise product are fused into one lane-dense store."""

    def kernel(*refs):
        pos = 0
        outs = []
        for n_layers in layers_per_tower:
            x_ref = refs[pos]; pos += 1
            h = x_ref[...].astype(jnp.bfloat16)
            for layer in range(n_layers):
                wt_ref, b_ref = refs[pos], refs[pos + 1]; pos += 2
                z = jnp.dot(h, wt_ref[...], preferred_element_type=jnp.float32)
                z = z + b_ref[...]
                if layer + 1 < n_layers:
                    # eval-mode Dropout = identity; BatchNorm folded into (wt, b)
                    h = jnp.maximum(z, 0.0).astype(jnp.bfloat16)
                else:
                    h = jax.nn.sigmoid(z)
            outs.append(h)
        o_ref = refs[pos]
        res = outs[0]
        for other in outs[1:]:
            res = res * other
        o_ref[...] = res.astype(o_ref.dtype)

    return kernel


def _layers(p):
    return [(p["w_in_t"], p["b_in"])] + list(p["hidden"]) + [(p["w_out_t"], p["b_out"])]


def _fused_fits(towers, budget_bytes=24 << 20):
    total = 0
    for _, p in towers:
        for wt, b in _layers(p):
            total += 2 * (int(wt.size) * wt.dtype.itemsize + int(b.size) * b.dtype.itemsize)
    return total <= budget_bytes


def _forward_fused(towers, M):
    tm, Mp = _pick_m_tile(M)
    out_size = towers[0][1]["out_size"]
    Op = towers[0][1]["w_out_t"].shape[1]
    for _, p in towers:
        assert p["out_size"] == out_size and p["w_out_t"].shape[1] == Op

    args, in_specs, layer_counts = [], [], []
    flops = transc = bytes_acc = 0
    param_bytes = in_tile_bytes = 0
    max_dim = Op
    for x, p in towers:
        Kp = p["w_in_t"].shape[0]
        if x.shape[1] != Kp:
            x = jnp.pad(x, ((0, 0), (0, Kp - x.shape[1])))
        if Mp != M:
            x = jnp.pad(x, ((0, Mp - M), (0, 0)))
        args.append(x)
        in_specs.append(pl.BlockSpec((tm, Kp), lambda i: (i, 0)))
        bytes_acc += int(x.size) * x.dtype.itemsize
        in_tile_bytes += 2 * tm * Kp * x.dtype.itemsize
        max_dim = max(max_dim, Kp)

        layers = _layers(p)
        layer_counts.append(len(layers))
        for wt, b in layers:
            args += [wt, b]
            in_specs += [pl.BlockSpec(tuple(wt.shape), lambda i: (0, 0)),   # resident weight
                         pl.BlockSpec(tuple(b.shape), lambda i: (0, 0))]    # resident bias
            flops += 2 * Mp * int(wt.shape[0]) * int(wt.shape[1])
            pb = int(wt.size) * wt.dtype.itemsize + int(b.size) * b.dtype.itemsize
            param_bytes += pb
            bytes_acc += pb
            max_dim = max(max_dim, int(wt.shape[1]))
        transc += Mp * Op
    bytes_acc += Mp * Op * 4

    need = (2 * param_bytes          # resident params (double-buffered by the pipeline)
            + in_tile_bytes          # input tiles
            + 2 * tm * Op * 4        # output tile
            + 8 * tm * max_dim * 4)  # live activation values (slack)

    out = pl.pallas_call(
        _make_fused_kernel(tuple(layer_counts)),
        out_shape=jax.ShapeDtypeStruct((Mp, Op), jnp.float32),
        grid_spec=pltpu.PrefetchScalarGridSpec(
            num_scalar_prefetch=0,
            grid=(Mp // tm,),
            in_specs=in_specs,
            out_specs=pl.BlockSpec((tm, Op), lambda i: (i, 0)),
        ),
        compiler_params=pltpu.CompilerParams(
            dimension_semantics=("parallel",),
            vmem_limit_bytes=_vmem_limit(need),
        ),
        cost_estimate=pl.CostEstimate(flops=int(flops), transcendentals=int(transc),
                                      bytes_accessed=int(bytes_acc)),
    )(*args)
    return out[:M, :out_size]


# ------------------------- tiled tower / joint fallback ----------------------

def _tower_tiled(x_padded, params, tm, *, mul_with=None):
    """One NeuralNetwork tower + sigmoid on an already M-padded input (large-H fallback)."""
    Kp = params["w_in_t"].shape[0]
    if x_padded.shape[1] != Kp:
        x_padded = jnp.pad(x_padded, ((0, 0), (0, Kp - x_padded.shape[1])))
    h = linear_act(x_padded, params["w_in_t"], params["b_in"],
                   activation="relu", tm=tm, out_dtype=jnp.bfloat16)
    for wt, b in params["hidden"]:
        # eval-mode Dropout = identity; BatchNorm folded into (wt, b)
        h = linear_act(h, wt, b, activation="relu", tm=tm, out_dtype=jnp.bfloat16)
    return linear_act(h, params["w_out_t"], params["b_out"],
                      activation="sigmoid", mul_with=mul_with, tm=tm, out_dtype=jnp.float32)


def _forward_tiled(towers, M):
    tm, Mp = _pick_m_tile(M)
    xs = []
    for x, _ in towers:
        if Mp != M:
            x = jnp.pad(x, ((0, Mp - M), (0, 0)))   # pad batch ONCE for the whole chain
        xs.append(x)
    out_size = towers[0][1]["out_size"]
    if len(towers) == 2:
        emb0 = _tower_tiled(xs[0], towers[0][1], tm)                      # sigmoid(img), padded
        out = _tower_tiled(xs[1], towers[1][1], tm, mul_with=emb0)        # sigmoid(txt) * img
    else:
        out = _tower_tiled(xs[0], towers[0][1], tm)
    return out[:M, :out_size]


# ------------------------------ parameters -----------------------------------

def init_neural_network_params(key, in_size, hidden_size, out_size, n_hidden):
    """Raw params matching PyTorch defaults (Linear: U(-1/sqrt(fan_in), 1/sqrt(fan_in)));
    BatchNorm affine / running stats randomized so the fold is non-trivially tested."""

    def linear(k, fan_in, fan_out):
        kw, kb = jax.random.split(k)
        bound = 1.0 / jnp.sqrt(jnp.float32(fan_in))
        w = jax.random.uniform(kw, (fan_out, fan_in), jnp.float32, -bound, bound)
        b = jax.random.uniform(kb, (fan_out,), jnp.float32, -bound, bound)
        return w, b

    keys = jax.random.split(key, 2 + n_hidden)
    w_in, b_in = linear(keys[0], in_size, hidden_size)
    hidden = []
    for i in range(n_hidden):
        kl, kg, kb_, km, kv = jax.random.split(keys[1 + i], 5)
        w, b = linear(kl, hidden_size, hidden_size)
        hidden.append(dict(
            w=w, b=b,
            gamma=jax.random.uniform(kg, (hidden_size,), jnp.float32, 0.5, 1.5),
            beta=0.1 * jax.random.normal(kb_, (hidden_size,), jnp.float32),
            running_mean=0.1 * jax.random.normal(km, (hidden_size,), jnp.float32),
            running_var=jax.random.uniform(kv, (hidden_size,), jnp.float32, 0.5, 1.5),
        ))
    w_out, b_out = linear(keys[1 + n_hidden], hidden_size, out_size)
    return dict(w_in=w_in, b_in=b_in, hidden=hidden, w_out=w_out, b_out=b_out)


def prepare_nn_params(raw, eps=BN_EPS):
    """One-time prep (outside the hot path): transpose weights for x @ Wt, fold eval-mode
    BatchNorm into the preceding hidden Linear, cast weights to bf16, and zero-pad every
    feature dimension to a multiple of 128 so all kernel tiles are lane-dense."""
    hidden_size, in_size = raw["w_in"].shape
    out_size = raw["w_out"].shape[0]
    Kp = _round_up(in_size, _LANE)
    Hp = _round_up(hidden_size, _LANE)
    Op = _round_up(out_size, _LANE)

    def pad2(a, r, c):
        return jnp.pad(a, ((0, r - a.shape[0]), (0, c - a.shape[1])))

    def pad1(a, n):
        return jnp.pad(a, (0, n - a.shape[0])).astype(jnp.float32).reshape(1, n)

    prepared = dict(
        w_in_t=pad2(raw["w_in"].T, Kp, Hp).astype(jnp.bfloat16),
        b_in=pad1(raw["b_in"], Hp),
        w_out_t=pad2(raw["w_out"].T, Hp, Op).astype(jnp.bfloat16),
        b_out=pad1(raw["b_out"], Op),
        hidden=[],
        in_size=in_size, out_size=out_size,
    )
    for layer in raw["hidden"]:
        s = layer["gamma"] / jnp.sqrt(layer["running_var"] + eps)
        wt = (layer["w"] * s[:, None]).T
        b = layer["b"] * s + layer["beta"] - layer["running_mean"] * s
        prepared["hidden"].append((pad2(wt, Hp, Hp).astype(jnp.bfloat16), pad1(b, Hp)))
    return prepared


# --------------------------- module forward ----------------------------------

def joint_content_embedder(image_content=None, text_content=None, *,
                           image_params=None, text_params=None, force_tiled=False):
    """Pallas forward of JointContentEmbedder (eval mode)."""
    have_image = image_content is not None
    have_text = text_content is not None
    if not (have_image or have_text):
        raise NotImplementedError("Must give image or text embedding")

    towers = []
    if have_image:
        towers.append((image_content, image_params))
    if have_text:
        towers.append((text_content, text_params))
    M = towers[0][0].shape[0]

    if (not force_tiled) and _fused_fits(towers):
        return _forward_fused(towers, M)      # single pallas_call, everything fused
    return _forward_tiled(towers, M)          # per-layer tiled kernels for large H


# ------------------------------ reference ------------------------------------

def ref_neural_network(x, raw, eps=BN_EPS):
    h = jnp.maximum(x @ raw["w_in"].T + raw["b_in"], 0.0)
    for layer in raw["hidden"]:
        z = h @ layer["w"].T + layer["b"]
        z = (z - layer["running_mean"]) / jnp.sqrt(layer["running_var"] + eps)
        z = z * layer["gamma"] + layer["beta"]
        h = jnp.maximum(z, 0.0)
    return h @ raw["w_out"].T + raw["b_out"]


def _ref_joint(image_x, text_x, raw_img, raw_txt):
    out = None
    if image_x is not None:
        out = jax.nn.sigmoid(ref_neural_network(image_x, raw_img))
    if text_x is not None:
        t = jax.nn.sigmoid(ref_neural_network(text_x, raw_txt))
        out = t if out is None else out * t
    return out


if __name__ == "__main__":
    key = jax.random.PRNGKey(0)

    def check(got, want, name, atol=3e-2):
        got = jax.block_until_ready(got)
        assert got.shape == want.shape, (name, got.shape, want.shape)
        err = float(jnp.max(jnp.abs(got - want)))
        assert err < atol, (name, err)   # bf16 MXU vs f32 reference

    # ---- Test 1: lane-dense demo shapes -> fully-fused single-kernel path ----
    k1, k2, k3, k4, key = jax.random.split(key, 5)
    batch, img_in, txt_in, hidden, out_sz, n_hidden = 64, 256, 128, 128, 128, 1
    raw_img = init_neural_network_params(k1, img_in, hidden, out_sz, n_hidden)
    raw_txt = init_neural_network_params(k2, txt_in, hidden, out_sz, n_hidden)
    img_p, txt_p = prepare_nn_params(raw_img), prepare_nn_params(raw_txt)
    img_x = jax.random.normal(k3, (batch, img_in), jnp.float32)
    txt_x = jax.random.normal(k4, (batch, txt_in), jnp.float32)

    check(joint_content_embedder(img_x, txt_x, image_params=img_p, text_params=txt_p),
          _ref_joint(img_x, txt_x, raw_img, raw_txt), "joint/fused")
    check(joint_content_embedder(image_content=img_x, image_params=img_p, text_params=txt_p),
          _ref_joint(img_x, None, raw_img, raw_txt), "image-only/fused")
    check(joint_content_embedder(text_content=txt_x, image_params=img_p, text_params=txt_p),
          _ref_joint(None, txt_x, raw_img, raw_txt), "text-only/fused")

    # ---- Test 2: ragged batch + non-128 dims (exercise padding) + tiled path --
    k1, k2, k3, k4, key = jax.random.split(key, 5)
    batch, img_in, txt_in, hidden, out_sz, n_hidden = 37, 200, 96, 160, 72, 2
    raw_img = init_neural_network_params(k1, img_in, hidden, out_sz, n_hidden)
    raw_txt = init_neural_network_params(k2, txt_in, hidden, out_sz, n_hidden)
    img_p, txt_p = prepare_nn_params(raw_img), prepare_nn_params(raw_txt)
    img_x = jax.random.normal(k3, (batch, img_in), jnp.float32)
    txt_x = jax.random.normal(k4, (batch, txt_in), jnp.float32)
    want = _ref_joint(img_x, txt_x, raw_img, raw_txt)

    check(joint_content_embedder(img_x, txt_x, image_params=img_p, text_params=txt_p),
          want, "joint/fused/ragged")
    check(joint_content_embedder(img_x, txt_x, image_params=img_p, text_params=txt_p,
                                 force_tiled=True),
          want, "joint/tiled/ragged")

    print("KERNEL_OK")
</pallas_src>

<mosaic_0001>
module attributes {stable_mosaic.version = 11 : i64} {
  func.func @kernel(%arg0: i32, %arg1: memref<32x256xf32, #tpu.memory_space<vmem>>, %arg2: memref<256x128xbf16, #tpu.memory_space<vmem>>, %arg3: memref<1x128xf32, #tpu.memory_space<vmem>>, %arg4: memref<128x128xbf16, #tpu.memory_space<vmem>>, %arg5: memref<1x128xf32, #tpu.memory_space<vmem>>, %arg6: memref<128x128xbf16, #tpu.memory_space<vmem>>, %arg7: memref<1x128xf32, #tpu.memory_space<vmem>>, %arg8: memref<32x128xf32, #tpu.memory_space<vmem>>, %arg9: memref<128x128xbf16, #tpu.memory_space<vmem>>, %arg10: memref<1x128xf32, #tpu.memory_space<vmem>>, %arg11: memref<128x128xbf16, #tpu.memory_space<vmem>>, %arg12: memref<1x128xf32, #tpu.memory_space<vmem>>, %arg13: memref<128x128xbf16, #tpu.memory_space<vmem>>, %arg14: memref<1x128xf32, #tpu.memory_space<vmem>>, %arg15: memref<32x128xf32, #tpu.memory_space<vmem>>) attributes {dimension_semantics = [#tpu.dimension_semantics<parallel>], iteration_bounds = array<i64: 2>, scalar_prefetch = 0 : i64, scratch_operands = 0 : i64, tpu.core_type = #tpu.core_type<tc>, window_params = [{transform_indices = @transform_0, window_bounds = array<i64: 32, 256>}, {pipeline_mode = #tpu.pipeline_mode<synchronous>, transform_indices = @transform_1, window_bounds = array<i64: 256, 128>}, {pipeline_mode = #tpu.pipeline_mode<synchronous>, transform_indices = @transform_2, window_bounds = array<i64: 1, 128>}, {pipeline_mode = #tpu.pipeline_mode<synchronous>, transform_indices = @transform_3, window_bounds = array<i64: 128, 128>}, {pipeline_mode = #tpu.pipeline_mode<synchronous>, transform_indices = @transform_4, window_bounds = array<i64: 1, 128>}, {pipeline_mode = #tpu.pipeline_mode<synchronous>, transform_indices = @transform_5, window_bounds = array<i64: 128, 128>}, {pipeline_mode = #tpu.pipeline_mode<synchronous>, transform_indices = @transform_6, window_bounds = array<i64: 1, 128>}, {transform_indices = @transform_7, window_bounds = array<i64: 32, 128>}, {pipeline_mode = #tpu.pipeline_mode<synchronous>, transform_indices = @transform_8, window_bounds = array<i64: 128, 128>}, {pipeline_mode = #tpu.pipeline_mode<synchronous>, transform_indices = @transform_9, window_bounds = array<i64: 1, 128>}, {pipeline_mode = #tpu.pipeline_mode<synchronous>, transform_indices = @transform_10, window_bounds = array<i64: 128, 128>}, {pipeline_mode = #tpu.pipeline_mode<synchronous>, transform_indices = @transform_11, window_bounds = array<i64: 1, 128>}, {pipeline_mode = #tpu.pipeline_mode<synchronous>, transform_indices = @transform_12, window_bounds = array<i64: 128, 128>}, {pipeline_mode = #tpu.pipeline_mode<synchronous>, transform_indices = @transform_13, window_bounds = array<i64: 1, 128>}, {transform_indices = @transform_14, window_bounds = array<i64: 32, 128>}]} {
    %c0 = arith.constant 0 : index
    %c0_0 = arith.constant 0 : index
    %0 = vector.load %arg1[%c0, %c0_0] : memref<32x256xf32, #tpu.memory_space<vmem>>, vector<32x256xf32>
    %1 = arith.truncf %0 : vector<32x256xf32> to vector<32x256xbf16>
    %c0_1 = arith.constant 0 : index
    %c0_2 = arith.constant 0 : index
    %2 = vector.load %arg2[%c0_1, %c0_2] : memref<256x128xbf16, #tpu.memory_space<vmem>>, vector<256x128xbf16>
    %cst = arith.constant dense<0.000000e+00> : vector<32x128xf32>
    %3 = tpu.matmul %1, %2, %cst {dimension_numbers = #tpu.dot_dimension_numbers<[1], [0], [0], [1], [0, 0, 1, 1], [], []>} : vector<32x256xbf16>, vector<256x128xbf16>, vector<32x128xf32> -> vector<32x128xf32>
    %c0_3 = arith.constant 0 : index
    %c0_4 = arith.constant 0 : index
    %4 = vector.load %arg3[%c0_3, %c0_4] : memref<1x128xf32, #tpu.memory_space<vmem>>, vector<1x128xf32>
    %5 = vector.broadcast %4 : vector<1x128xf32> to vector<32x128xf32>
    %6 = arith.addf %3, %5 : vector<32x128xf32>
    %cst_5 = arith.constant 0.000000e+00 : f32
    %7 = vector.broadcast %cst_5 : f32 to vector<32x128xf32>
    %8 = arith.maximumf %6, %7 : vector<32x128xf32>
    %9 = arith.truncf %8 : vector<32x128xf32> to vector<32x128xbf16>
    %c0_6 = arith.constant 0 : index
    %c0_7 = arith.constant 0 : index
    %10 = vector.load %arg4[%c0_6, %c0_7] : memref<128x128xbf16, #tpu.memory_space<vmem>>, vector<128x128xbf16>
    %cst_8 = arith.constant dense<0.000000e+00> : vector<32x128xf32>
    %11 = tpu.matmul %9, %10, %cst_8 {dimension_numbers = #tpu.dot_dimension_numbers<[1], [0], [0], [1], [0, 0, 1, 1], [], []>} : vector<32x128xbf16>, vector<128x128xbf16>, vector<32x128xf32> -> vector<32x128xf32>
    %c0_9 = arith.constant 0 : index
    %c0_10 = arith.constant 0 : index
    %12 = vector.load %arg5[%c0_9, %c0_10] : memref<1x128xf32, #tpu.memory_space<vmem>>, vector<1x128xf32>
    %13 = vector.broadcast %12 : vector<1x128xf32> to vector<32x128xf32>
    %14 = arith.addf %11, %13 : vector<32x128xf32>
    %cst_11 = arith.constant 0.000000e+00 : f32
    %15 = vector.broadcast %cst_11 : f32 to vector<32x128xf32>
    %16 = arith.maximumf %14, %15 : vector<32x128xf32>
    %17 = arith.truncf %16 : vector<32x128xf32> to vector<32x128xbf16>
    %c0_12 = arith.constant 0 : index
    %c0_13 = arith.constant 0 : index
    %18 = vector.load %arg6[%c0_12, %c0_13] : memref<128x128xbf16, #tpu.memory_space<vmem>>, vector<128x128xbf16>
    %cst_14 = arith.constant dense<0.000000e+00> : vector<32x128xf32>
    %19 = tpu.matmul %17, %18, %cst_14 {dimension_numbers = #tpu.dot_dimension_numbers<[1], [0], [0], [1], [0, 0, 1, 1], [], []>} : vector<32x128xbf16>, vector<128x128xbf16>, vector<32x128xf32> -> vector<32x128xf32>
    %c0_15 = arith.constant 0 : index
    %c0_16 = arith.constant 0 : index
    %20 = vector.load %arg7[%c0_15, %c0_16] : memref<1x128xf32, #tpu.memory_space<vmem>>, vector<1x128xf32>
    %21 = vector.broadcast %20 : vector<1x128xf32> to vector<32x128xf32>
    %22 = arith.addf %19, %21 : vector<32x128xf32>
    %23 = arith.negf %22 : vector<32x128xf32>
    %24 = math.exp %23 : vector<32x128xf32>
    %cst_17 = arith.constant 1.000000e+00 : f32
    %25 = vector.broadcast %cst_17 : f32 to vector<32x128xf32>
    %26 = arith.addf %25, %24 : vector<32x128xf32>
    %27 = arith.divf %25, %26 : vector<32x128xf32>
    %c0_18 = arith.constant 0 : index
    %c0_19 = arith.constant 0 : index
    %28 = vector.load %arg8[%c0_18, %c0_19] : memref<32x128xf32, #tpu.memory_space<vmem>>, vector<32x128xf32>
    %29 = arith.truncf %28 : vector<32x128xf32> to vector<32x128xbf16>
    %c0_20 = arith.constant 0 : index
    %c0_21 = arith.constant 0 : index
    %30 = vector.load %arg9[%c0_20, %c0_21] : memref<128x128xbf16, #tpu.memory_space<vmem>>, vector<128x128xbf16>
    %cst_22 = arith.constant dense<0.000000e+00> : vector<32x128xf32>
    %31 = tpu.matmul %29, %30, %cst_22 {dimension_numbers = #tpu.dot_dimension_numbers<[1], [0], [0], [1], [0, 0, 1, 1], [], []>} : vector<32x128xbf16>, vector<128x128xbf16>, vector<32x128xf32> -> vector<32x128xf32>
    %c0_23 = arith.constant 0 : index
    %c0_24 = arith.constant 0 : index
    %32 = vector.load %arg10[%c0_23, %c0_24] : memref<1x128xf32, #tpu.memory_space<vmem>>, vector<1x128xf32>
    %33 = vector.broadcast %32 : vector<1x128xf32> to vector<32x128xf32>
    %34 = arith.addf %31, %33 : vector<32x128xf32>
    %cst_25 = arith.constant 0.000000e+00 : f32
    %35 = vector.broadcast %cst_25 : f32 to vector<32x128xf32>
    %36 = arith.maximumf %34, %35 : vector<32x128xf32>
    %37 = arith.truncf %36 : vector<32x128xf32> to vector<32x128xbf16>
    %c0_26 = arith.constant 0 : index
    %c0_27 = arith.constant 0 : index
    %38 = vector.load %arg11[%c0_26, %c0_27] : memref<128x128xbf16, #tpu.memory_space<vmem>>, vector<128x128xbf16>
    %cst_28 = arith.constant dense<0.000000e+00> : vector<32x128xf32>
    %39 = tpu.matmul %37, %38, %cst_28 {dimension_numbers = #tpu.dot_dimension_numbers<[1], [0], [0], [1], [0, 0, 1, 1], [], []>} : vector<32x128xbf16>, vector<128x128xbf16>, vector<32x128xf32> -> vector<32x128xf32>
    %c0_29 = arith.constant 0 : index
    %c0_30 = arith.constant 0 : index
    %40 = vector.load %arg12[%c0_29, %c0_30] : memref<1x128xf32, #tpu.memory_space<vmem>>, vector<1x128xf32>
    %41 = vector.broadcast %40 : vector<1x128xf32> to vector<32x128xf32>
    %42 = arith.addf %39, %41 : vector<32x128xf32>
    %cst_31 = arith.constant 0.000000e+00 : f32
    %43 = vector.broadcast %cst_31 : f32 to vector<32x128xf32>
    %44 = arith.maximumf %42, %43 : vector<32x128xf32>
    %45 = arith.truncf %44 : vector<32x128xf32> to vector<32x128xbf16>
    %c0_32 = arith.constant 0 : index
    %c0_33 = arith.constant 0 : index
    %46 = vector.load %arg13[%c0_32, %c0_33] : memref<128x128xbf16, #tpu.memory_space<vmem>>, vector<128x128xbf16>
    %cst_34 = arith.constant dense<0.000000e+00> : vector<32x128xf32>
    %47 = tpu.matmul %45, %46, %cst_34 {dimension_numbers = #tpu.dot_dimension_numbers<[1], [0], [0], [1], [0, 0, 1, 1], [], []>} : vector<32x128xbf16>, vector<128x128xbf16>, vector<32x128xf32> -> vector<32x128xf32>
    %c0_35 = arith.constant 0 : index
    %c0_36 = arith.constant 0 : index
    %48 = vector.load %arg14[%c0_35, %c0_36] : memref<1x128xf32, #tpu.memory_space<vmem>>, vector<1x128xf32>
    %49 = vector.broadcast %48 : vector<1x128xf32> to vector<32x128xf32>
    %50 = arith.addf %47, %49 : vector<32x128xf32>
    %51 = arith.negf %50 : vector<32x128xf32>
    %52 = math.exp %51 : vector<32x128xf32>
    %cst_37 = arith.constant 1.000000e+00 : f32
    %53 = vector.broadcast %cst_37 : f32 to vector<32x128xf32>
    %54 = arith.addf %53, %52 : vector<32x128xf32>
    %55 = arith.divf %53, %54 : vector<32x128xf32>
    %56 = arith.mulf %27, %55 : vector<32x128xf32>
    %c0_38 = arith.constant 0 : index
    %c0_39 = arith.constant 0 : index
    %57 = vector.load %arg15[%c0_38, %c0_39] : memref<32x128xf32, #tpu.memory_space<vmem>>, vector<32x128xf32>
    tpu.vector_store %arg15[%c0_38, %c0_39], %56 {strides = array<i32>} : memref<32x128xf32, #tpu.memory_space<vmem>>, vector<32x128xf32>,
    return
  }
  func.func @transform_0(%arg0: i32) -> (i32, i32) {
    %c0_i32 = arith.constant 0 : i32
    %c0_i32_0 = arith.constant 0 : i32
    return %arg0, %c0_i32 : i32, i32
  }
  func.func @transform_1(%arg0: i32) -> (i32, i32) {
    %c0_i32 = arith.constant 0 : i32
    %c0_i32_0 = arith.constant 0 : i32
    %c0_i32_1 = arith.constant 0 : i32
    return %c0_i32, %c0_i32_0 : i32, i32
  }
  func.func @transform_2(%arg0: i32) -> (i32, i32) {
    %c0_i32 = arith.constant 0 : i32
    %c0_i32_0 = arith.constant 0 : i32
    %c0_i32_1 = arith.constant 0 : i32
    return %c0_i32, %c0_i32_0 : i32, i32
  }
  func.func @transform_3(%arg0: i32) -> (i32, i32) {
    %c0_i32 = arith.constant 0 : i32
    %c0_i32_0 = arith.constant 0 : i32
    %c0_i32_1 = arith.constant 0 : i32
    return %c0_i32, %c0_i32_0 : i32, i32
  }
  func.func @transform_4(%arg0: i32) -> (i32, i32) {
    %c0_i32 = arith.constant 0 : i32
    %c0_i32_0 = arith.constant 0 : i32
    %c0_i32_1 = arith.constant 0 : i32
    return %c0_i32, %c0_i32_0 : i32, i32
  }
  func.func @transform_5(%arg0: i32) -> (i32, i32) {
    %c0_i32 = arith.constant 0 : i32
    %c0_i32_0 = arith.constant 0 : i32
    %c0_i32_1 = arith.constant 0 : i32
    return %c0_i32, %c0_i32_0 : i32, i32
  }
  func.func @transform_6(%arg0: i32) -> (i32, i32) {
    %c0_i32 = arith.constant 0 : i32
    %c0_i32_0 = arith.constant 0 : i32
    %c0_i32_1 = arith.constant 0 : i32
    return %c0_i32, %c0_i32_0 : i32, i32
  }
  func.func @transform_7(%arg0: i32) -> (i32, i32) {
    %c0_i32 = arith.constant 0 : i32
    %c0_i32_0 = arith.constant 0 : i32
    return %arg0, %c0_i32 : i32, i32
  }
  func.func @transform_8(%arg0: i32) -> (i32, i32) {
    %c0_i32 = arith.constant 0 : i32
    %c0_i32_0 = arith.constant 0 : i32
    %c0_i32_1 = arith.constant 0 : i32
    return %c0_i32, %c0_i32_0 : i32, i32
  }
  func.func @transform_9(%arg0: i32) -> (i32, i32) {
    %c0_i32 = arith.constant 0 : i32
    %c0_i32_0 = arith.constant 0 : i32
    %c0_i32_1 = arith.constant 0 : i32
    return %c0_i32, %c0_i32_0 : i32, i32
  }
  func.func @transform_10(%arg0: i32) -> (i32, i32) {
    %c0_i32 = arith.constant 0 : i32
    %c0_i32_0 = arith.constant 0 : i32
    %c0_i32_1 = arith.constant 0 : i32
    return %c0_i32, %c0_i32_0 : i32, i32
  }
  func.func @transform_11(%arg0: i32) -> (i32, i32) {
    %c0_i32 = arith.constant 0 : i32
    %c0_i32_0 = arith.constant 0 : i32
    %c0_i32_1 = arith.constant 0 : i32
    return %c0_i32, %c0_i32_0 : i32, i32
  }
  func.func @transform_12(%arg0: i32) -> (i32, i32) {
    %c0_i32 = arith.constant 0 : i32
    %c0_i32_0 = arith.constant 0 : i32
    %c0_i32_1 = arith.constant 0 : i32
    return %c0_i32, %c0_i32_0 : i32, i32
  }
  func.func @transform_13(%arg0: i32) -> (i32, i32) {
    %c0_i32 = arith.constant 0 : i32
    %c0_i32_0 = arith.constant 0 : i32
    %c0_i32_1 = arith.constant 0 : i32
    return %c0_i32, %c0_i32_0 : i32, i32
  }
  func.func @transform_14(%arg0: i32) -> (i32, i32) {
    %c0_i32 = arith.constant 0 : i32
    %c0_i32_0 = arith.constant 0 : i32
    return %arg0, %c0_i32 : i32, i32
  }
}

</mosaic_0001>

<bundles_post_ra>
// kernel: tpu_custom_call.1
= control target key start
LH: loop header
LB: loop body
LE: loop exit
PB: predicated region body
PF: predicated region fallthrough
CT: control target
= control target key end

     0   :  { %s2897_s0 = inlined_call_operand.hbm [shape: f32[64,256], index: 0, kind: input, shape index: {}]   ;;  %s2898_s1 = inlined_call_operand.hbm [shape: bf16[256,128], index: 1, kind: input, shape index: {}]   ;;  %s2899_s2 = inlined_call_operand.vmem [shape: f32[1,128], index: 2, kind: input, shape index: {}]   ;;  %s2900_s3 = inlined_call_operand.hbm [shape: bf16[128,128], index: 3, kind: input, shape index: {}]   ;;  %s2901_s4 = inlined_call_operand.vmem [shape: f32[1,128], index: 4, kind: input, shape index: {}]   ;;  %s2902_s5 = inlined_call_operand.hbm [shape: bf16[128,128], index: 5, kind: input, shape index: {}]   ;;  %s2903_s6 = inlined_call_operand.vmem [shape: f32[1,128], index: 6, kind: input, shape index: {}]   ;;  %s2904_s7 = inlined_call_operand.hbm [shape: f32[64,128], index: 7, kind: input, shape index: {}]   ;;  %s2905_s8 = inlined_call_operand.hbm [shape: bf16[128,128], index: 8, kind: input, shape index: {}]   ;;  %s2906_s9 = inlined_call_operand.vmem [shape: f32[1,128], index: 9, kind: input, shape index: {}]   ;;  %s2907_s10 = inlined_call_operand.hbm [shape: bf16[128,128], index: 10, kind: input, shape index: {}]   ;;  %s2908_s11 = inlined_call_operand.vmem [shape: f32[1,128], index: 11, kind: input, shape index: {}]   ;;  %s2909_s12 = inlined_call_operand.hbm [shape: bf16[128,128], index: 12, kind: input, shape index: {}]   ;;  %s2910_s13 = inlined_call_operand.vmem [shape: f32[1,128], index: 13, kind: input, shape index: {}]   ;;  %s2911_s14 = inlined_call_operand.hbm [shape: f32[64,128], index: 14, kind: output, shape index: {}]  }
   0x1   :  { %2930 = sst [smem:[#allocation30_spill]] %s2897_s0 }
   0x2   :  { %2931 = sst [smem:[#allocation31_spill]] %s2898_s1 }
   0x3   :  { %2932 = sst [smem:[#allocation32_spill]] %s2900_s3 }
   0x4   :  { %2933 = sst [smem:[#allocation33_spill]] %s2902_s5 }
   0x5   :  { %2934 = sst [smem:[#allocation34_spill]] %s2911_s14 }
   0x6   :  { %19 = vsyncpa [#allocation3], 0 }
   0x7   :  { %21 = vsyncpa [#allocation3 + $0x1], 0 }
   0x8   :  { %22 = vsyncpa [#allocation6], 0 }
   0x9   :  { %23 = vsyncpa [#allocation9], 0 }
   0xa   :  { %24 = vsyncpa [#allocation14], 0 }
   0xb   :  { %25 = vsyncpa [#allocation4], 0 }
   0xc   :  { %27 = vsyncpa [#allocation4 + $0x1], 0  ;;  %s2546_s29 = smov 0   ;;  %s2548_s30 = smov 0  }
   0xd   :  { %s2550_s15 = smov 0   ;;  %s2552_s16 = smov 0  }
   0xe LB: > { %2935 = sst [smem:[#allocation24_spill]] %s2440_s29  ;;  %s2454_s17 = smov [#allocation5]   ;;  %s2452_s16 = sphi %s2552_s16, %s2974_s16   ;;  %s2448_s15 = sphi %s2550_s15, %s2976_s15   ;;  %s2444_s30 = sphi %s2548_s30, %s2978_s30   ;;  %s2440_s29 = sphi %s2546_s29, %s2977_s29  }
   0xf   : > { %2936 = sst [smem:[#allocation25_spill]] %s2448_s15  ;;  %s380_s18 = sshll.u32 %s2454_s17, 4  ;;  %s381_s18 = int_to_ptr.vmem [resolvable:$true] %s380_s18 }
  0x10   : > { %s2567_s19 = sadd.s32 4294967295, %s2452_s16   ;;  %p1662_p0 = scmp.ge.s32.totalorder %s2452_s16, 1 }
  0x11   : > { %p2925_p1 = scmp.eq.s32.totalorder %s2567_s19, 0  ;;  %p368_p2 = scmp.lt.s32.totalorder %s2452_s16, 3 }
  0x12   : > { %s2455_s21 = smov [#allocation7]   ;;  %s2456_s24 = smov [#allocation8]  }
  0x13   : > { %p2572_p3 = pnand %p1662_p0, %p368_p2  ;;  %s396_s22 = sshll.u32 %s2455_s21, 4  ;;  %s2585_s22 = int_to_ptr.vmem [resolvable:$true] %s396_s22 }
  0x14   : > { %s412_s25 = sshll.u32 %s2456_s24, 4  ;;  %s2163_s27 = scalar_lea.vmem %s381_s18, 2048  ;;  %s2587_s25 = int_to_ptr.vmem [resolvable:$true] %s412_s25 }
  0x15   : > { %s2937_s20 = scalar_select %p2572_p3, 1, 0 }
  0x16   : > { %p1974_p5 = pneg %p2572_p3  ;;  %p2164_p8 = scmp.ne.s32.totalorder %s381_s18, %s2163_s27 }
  0x17   : > { %p2171_p11 = scmp.lt.s32.totalorder %s381_s18, %s381_s18  ;;  %p2172_p12 = scmp.lt.s32.totalorder %s2163_s27, %s2163_s27 }
  0x18   : > { %p2581_p6 = pnand %p1974_p5, %p2925_p1 }
  0x19   : > { %p2173_p13 = por %p2172_p12, %p2171_p11 }
  0x1a   : > { %s2938_s23 = scalar_select %p2581_p6, 1, 0 }
  0x1b   : > { %p2591_p7 = pneg %p2581_p6 }
  0x1d   : > { %p2166_p9 = pnand %p2164_p8, %p2591_p7 }
  0x1f   : > { %p2167_p10 = pneg %p2166_p9 }
  0x21   : > { %p2174_p0 = pnand %p2173_p13, %p2167_p10 }
  0x23   : > { %2177 = shalt.err (!%p2174_p0)
}
  0x24   : > { %s2913_s28 = smov 64   ;;  %s2916_s17 = smov 4  }
  0x25   : > { %s2940_s1 = sld [smem:[#allocation31_spill]]  ;;  %s2189_s14 = scalar_lea.vmem %s2585_s22, 1024 }
  0x26   : > { %p2190_p2 = scmp.ne.s32.totalorder %s2585_s22, %s2189_s14  ;;  %p2197_p9 = scmp.lt.s32.totalorder %s2585_s22, %s2585_s22 }
  0x27   : > { %p2198_p10 = scmp.lt.s32.totalorder %s2189_s14, %s2189_s14 }
  0x28   : > { %p2192_p5 = pnand %p2190_p2, %p2591_p7 }
  0x29   : > { %p2199_p11 = por %p2198_p10, %p2197_p9 }
  0x2a   : > { %p2193_p8 = pneg %p2192_p5 }
  0x2b   : > { %1977 = dma.hbm_to_vmem [thread:$0]  (!%p2581_p6), %s2940_s1, 2048, %s381_s18, [#allocation6], %s2913_s28, %s2913_s28, %s2916_s17  }
  0x2c   : > { %p2200_p12 = pnand %p2199_p11, %p2193_p8 }
  0x2e   : > { %2203 = shalt.err (!%p2200_p12)
}
  0x2f   : > { %s2941_s3 = sld [smem:[#allocation32_spill]]  ;;  %s2215_s18 = scalar_lea.vmem %s2587_s25, 1024 }
  0x30   : > { %p2216_p13 = scmp.ne.s32.totalorder %s2587_s25, %s2215_s18  ;;  %p2223_p5 = scmp.lt.s32.totalorder %s2587_s25, %s2587_s25 }
  0x31   : > { %p2224_p8 = scmp.lt.s32.totalorder %s2215_s18, %s2215_s18 }
  0x32   : > { %p2218_p0 = pnand %p2216_p13, %p2591_p7 }
  0x33   : > { %p2225_p9 = por %p2224_p8, %p2223_p5 }
  0x34   : > { %p2219_p2 = pneg %p2218_p0 }
  0x35   : > { %1980 = dma.hbm_to_vmem [thread:$0]  (!%p2581_p6), %s2941_s3, 1024, %s2585_s22, [#allocation6], %s2913_s28, %s2913_s28, %s2916_s17  }
  0x36   : > { %p2226_p10 = pnand %p2225_p9, %p2219_p2 }
  0x38   : > { %2229 = shalt.err (!%p2226_p10)
}
  0x39   : > { %s2942_s5 = sld [smem:[#allocation33_spill]]  ;;  %s1661_s22 = sadd.s32 4294967294, %s2452_s16  }
  0x3a   : > { %s2637_s27 = sadd.s32 1, %s2452_s16   ;;  %s40_s21 = sadd.s32 1, %s2448_s15 }
  0x3b   : > { %2943 = sst [smem:[#allocation26_spill]] %s2637_s27  ;;  %s37_s18 = ssub.s32 %s2452_s16, %s2637_s27 }
  0x3c   : > { %p47_p11 = scmp.ne.s32.totalorder %s2448_s15, %s2444_s30  ;;  %p38_p12 = scmp.eq.s32.totalorder %s37_s18, 0 }
  0x3d   : > { %p48_p13 = scmp.eq.s32.totalorder %s2452_s16, 0  ;;  %p53_p0 = scmp.ne.s32.totalorder %s2444_s30, %s2440_s29 }
  0x3e   : > { %p355_p2 = scmp.eq.s32.totalorder %s2567_s19, 1  ;;  %p361_p10 = scmp.eq.s32.totalorder %s1661_s22, 1 }
  0x3f   : > { %1983 = dma.hbm_to_vmem [thread:$0]  (!%p2581_p6), %s2942_s5, 1024, %s2587_s25, [#allocation9], %s2913_s28, %s2913_s28, %s2916_s17  }
  0x40   : > { %s2649_s14 = scalar_select %p38_p12, %s2448_s15, %s40_s21  }
  0x41   : > { %p49_p5 = por %p48_p13, %p47_p11  ;;  %p2653_p8 = por %p2925_p1, %p53_p0 }
  0x42   : > { %2944 = sst [smem:[#allocation27_spill]] %s2649_s14  ;;  %p2657_p9 = por %p355_p2, %p47_p11 }
  0x43   : > { %s2945_s25 = scalar_select %p2653_p8, 1, 0 }
  0x44   : > { %s2946_s24 = scalar_select %p2657_p9, 1, 0 }
  0x45   : > { %p2010_p4 = scmp.lt.s32.totalorder %s2452_s16, 2  ;;  %s477_s28 = sand.u32 1, %s2452_s16  }
  0x46   : > { %2947 = sst [smem:[#allocation28_spill]] %s2946_s24  ;;  %p2663_p3 = por %p361_p10, %p53_p0 }
  0x47   : > { %s479_s17 = sand.u32 1, %s2448_s15   ;;  %s1763_s21 = sshll.u32 %s2452_s16, 10 }
  0x48   : > { %s2948_s18 = scalar_select %p2663_p3, 1, 0 }
  0x49   : > { %s1670_s1 = sshll.u32 %s479_s17, 6  ;;  %s2950_s0 = sld [smem:[#allocation30_spill]] }
  0x4a   : > { %2949 = sst [smem:[#allocation29_spill]] %s2948_s18  ;;  %p2674_p11 = pnand %p2010_p4, %p49_p5 }
  0x4b   : > { %s481_s22 = scalar_lea.vmem [#allocation2], %s1670_s1  ;;  %s2680_s15 = sshll.u32 %s479_s17, 5 }
  0x4c   : > { %s489_s29 = sshll.u32 %s481_s22, 4  ;;  %s2682_s18 = scalar_lea.sflag [#allocation3], %s477_s28  ;;  %s2678_s29 = int_to_ptr.vmem [resolvable:$true] %s489_s29 }
  0x4d   : > { %p2232_p13 = pneg %p2674_p11 }
  0x4f   : > { %s2672_s14 = scalar_lea.hbm %s2950_s0, %s1763_s21  ;;  %s2235_s24 = scalar_lea.hbm %s2950_s0, 2048 }
  0x50   : > { %s2230_s3 = scalar_lea.hbm %s2672_s14, 1024  ;;  %p2236_p2 = scmp.lt.s32.totalorder %s2672_s14, %s2950_s0 }
  0x51   : > { %p2231_p12 = scmp.ne.s32.totalorder %s2672_s14, %s2230_s3  ;;  %p2237_p5 = scmp.lt.s32.totalorder %s2235_s24, %s2230_s3 }
  0x53   : > { %p2233_p4 = pnand %p2232_p13, %p2231_p12  ;;  %p2238_p10 = por %p2237_p5, %p2236_p2 }
  0x55   : > { %p2234_p0 = pneg %p2233_p4 }
  0x57   : > { %p2239_p1 = pnand %p2238_p10, %p2234_p0 }
  0x59   : > { %2242 = shalt.err (!%p2239_p1)
}
  0x5a   : > { %s2243_s28 = scalar_lea.vmem %s2678_s29, 1024  ;;  %s2459_s17 = smov [#allocation2]  }
  0x5b   : > { %p2244_p3 = scmp.ne.s32.totalorder %s2678_s29, %s2243_s28  ;;  %s2248_s5 = sshll.u32 %s2459_s17, 4  ;;  %s2249_s5 = int_to_ptr.vmem [resolvable:$false] %s2248_s5 }
  0x5c   : > { %s2250_s21 = scalar_lea.vmem %s2249_s5, 2048  ;;  %p2251_p9 = scmp.lt.s32.totalorder %s2678_s29, %s2249_s5 }
  0x5d   : > { %p2246_p12 = pnand %p2244_p3, %p2232_p13  ;;  %p2252_p8 = scmp.lt.s32.totalorder %s2250_s21, %s2243_s28 }
  0x5f   : > { %p2247_p4 = pneg %p2246_p12  ;;  %p2253_p6 = por %p2252_p8, %p2251_p9 }
  0x61   : > { %p2254_p2 = pnand %p2253_p6, %p2247_p4 }
  0x63   : > { %2257 = shalt.err (!%p2254_p2)
}
  0x64   : > { %s2460_s24 = smov 256   ;;  %s2461_s3 = smov 16  }
  0x65   : > { %1996 = dma.hbm_to_vmem [thread:$0]  (!%p2674_p11), %s2672_s14, 1024, %s2678_s29, %s2682_s18, %s2460_s24, %s2460_s24, %s2461_s3  }
  0x66   : > { %s503_s1 = scalar_lea.vmem [#allocation10], %s2680_s15  ;;  %s2462_s17 = smov [#allocation11]  }
  0x67   : > { %s2710_s22 = sshll.u32 %s503_s1, 4  ;;  %s428_s0 = sshll.u32 %s2462_s17, 4  ;;  %s429_s0 = int_to_ptr.vmem [resolvable:$true] %s428_s0  ;;  %s2749_s22 = int_to_ptr.vmem [resolvable:$true] %s2710_s22 }
  0x68   : > { %s2269_s28 = scalar_lea.vmem %s429_s0, 1024  ;;  %p2277_p8 = scmp.lt.s32.totalorder %s429_s0, %s429_s0 }
  0x69   : > { %p2270_p1 = scmp.ne.s32.totalorder %s429_s0, %s2269_s28  ;;  %p2278_p9 = scmp.lt.s32.totalorder %s2269_s28, %s2269_s28 }
  0x6b   : > { %p2272_p3 = pnand %p2270_p1, %p2591_p7  ;;  %p2279_p0 = por %p2278_p9, %p2277_p8 }
  0x6d   : > { %p2273_p6 = pneg %p2272_p3 }
  0x6f   : > { %p2280_p5 = pnand %p2279_p0, %p2273_p6 }
  0x71   : > { %2283 = shalt.err (!%p2280_p5)
}
  0x72   : > { %p2952_p10 = scmp.ne.s32.totalorder %s2938_s23, 0  ;;  %s2953_s5 = smov 4  }
  0x73   : > { %s2954_s29 = smov 64   ;;  %s2463_s21 = smov [#allocation12]  }
  0x74   : > { %1986 = dma.hbm_to_vmem [thread:$0]  (!%p2952_p10), %s2905_s8, 1024, %s429_s0, [#allocation6], %s2954_s29, %s2954_s29, %s2953_s5  }
  0x75   : > { %s444_s24 = sshll.u32 %s2463_s21, 4  ;;  %s2464_s3 = smov [#allocation13]   ;;  %s445_s24 = int_to_ptr.vmem [resolvable:$true] %s444_s24 }
  0x76   : > { %s460_s1 = sshll.u32 %s2464_s3, 4  ;;  %s2295_s17 = scalar_lea.vmem %s445_s24, 1024  ;;  %s461_s1 = int_to_ptr.vmem [resolvable:$true] %s460_s1 }
  0x77   : > { %p2296_p12 = scmp.ne.s32.totalorder %s445_s24, %s2295_s17  ;;  %p2303_p1 = scmp.lt.s32.totalorder %s445_s24, %s445_s24 }
  0x78   : > { %p2304_p3 = scmp.lt.s32.totalorder %s2295_s17, %s2295_s17 }
  0x79   : > { %p2298_p4 = pnand %p2296_p12, %p2591_p7 }
  0x7a   : > { %p2305_p6 = por %p2304_p3, %p2303_p1 }
  0x7b   : > { %p2299_p2 = pneg %p2298_p4 }
  0x7d   : > { %p2306_p8 = pnand %p2305_p6, %p2299_p2 }
  0x7f   : > { %2309 = shalt.err (!%p2306_p8)
}
  0x80   : > { %1989 = dma.hbm_to_vmem [thread:$0]  (!%p2952_p10), %s2907_s10, 1024, %s445_s24, [#allocation9], %s2954_s29, %s2954_s29, %s2953_s5  }
  0x81   : > { %s1764_s15 = sshll.u32 %s2452_s16, 9  ;;  %s2321_s14 = scalar_lea.vmem %s461_s1, 1024 }
  0x82   : > { %p2322_p9 = scmp.ne.s32.totalorder %s461_s1, %s2321_s14  ;;  %p2329_p12 = scmp.lt.s32.totalorder %s461_s1, %s461_s1 }
  0x83   : > { %p2330_p4 = scmp.lt.s32.totalorder %s2321_s14, %s2321_s14 }
  0x84   : > { %p2324_p0 = pnand %p2322_p9, %p2591_p7 }
  0x85   : > { %p2331_p2 = por %p2330_p4, %p2329_p12 }
  0x86   : > { %p2325_p5 = pneg %p2324_p0 }
  0x88   : > { %p2332_p1 = pnand %p2331_p2, %p2325_p5 }
  0x8a   : > { %2335 = shalt.err (!%p2332_p1)
}
  0x8b   : > { %1992 = dma.hbm_to_vmem [thread:$0]  (!%p2952_p10), %s2909_s12, 1024, %s461_s1, [#allocation14], %s2954_s29, %s2954_s29, %s2953_s5  }
  0x8c   : > { %s2746_s17 = scalar_lea.hbm %s2904_s7, %s1764_s15  ;;  %s2341_s5 = scalar_lea.hbm %s2904_s7, 1024 }
  0x8d   : > { %s2336_s23 = scalar_lea.hbm %s2746_s17, 512  ;;  %p2342_p10 = scmp.lt.s32.totalorder %s2746_s17, %s2904_s7 }
  0x8e   : > { %p2337_p7 = scmp.ne.s32.totalorder %s2746_s17, %s2336_s23  ;;  %p2343_p8 = scmp.lt.s32.totalorder %s2341_s5, %s2336_s23 }
  0x90   : > { %p2339_p3 = pnand %p2337_p7, %p2232_p13  ;;  %p2344_p9 = por %p2343_p8, %p2342_p10 }
  0x92   : > { %p2340_p6 = pneg %p2339_p3 }
  0x94   : > { %p2345_p0 = pnand %p2344_p9, %p2340_p6 }
  0x96   : > { %2348 = shalt.err (!%p2345_p0)
}
  0x97   : > { %s2349_s15 = scalar_lea.vmem %s2749_s22, 512  ;;  %s2465_s14 = smov [#allocation10]  }
  0x98   : > { %p2350_p5 = scmp.ne.s32.totalorder %s2749_s22, %s2349_s15  ;;  %s2354_s21 = sshll.u32 %s2465_s14, 4  ;;  %s2355_s21 = int_to_ptr.vmem [resolvable:$false] %s2354_s21 }
  0x99   : > { %s2356_s3 = scalar_lea.vmem %s2355_s21, 1024  ;;  %p2357_p2 = scmp.lt.s32.totalorder %s2749_s22, %s2355_s21 }
  0x9a   : > { %p2352_p12 = pnand %p2350_p5, %p2232_p13  ;;  %p2358_p1 = scmp.lt.s32.totalorder %s2356_s3, %s2349_s15 }
  0x9c   : > { %p2353_p4 = pneg %p2352_p12  ;;  %p2359_p7 = por %p2358_p1, %p2357_p2 }
  0x9e   : > { %p2360_p3 = pnand %p2359_p7, %p2353_p4 }
  0xa0   : > { %2363 = shalt.err (!%p2360_p3)
}
  0xa1   : > { %s2466_s24 = smov 128   ;;  %s2467_s26 = smov 8  }
  0xa2   : > { %1999 = dma.hbm_to_vmem [thread:$0]  (!%p2674_p11), %s2746_s17, 512, %s2749_s22, %s2682_s18, %s2466_s24, %s2466_s24, %s2467_s26  }
  0xa3   : > { %p2955_p13 = scmp.ne.s32.totalorder %s2937_s20, 0 }
  0xa4   : > { %s524_s23 = sand.u32 (!%p2955_p13), 1, %s2567_s19   ;;  %s2778_s0 = sand.u32 (!%p2955_p13), 1, %s2444_s30  }
  0xa5   : > { %522 = sbr.rel (%p2955_p13) target bundleno = 1131 (0x46b), region = 76  ;;  %s1678_s28 = sshll.u32 (!%p2955_p13), %s2778_s0, 6 }
  0xa6   : > { %s525_s5 = scalar_lea.sflag (!%p2955_p13), [#allocation3], %s524_s23  ;;  %s2781_s29 = scalar_lea.vmem (!%p2955_p13), [#allocation2], %s1678_s28 }
  0xa7   : > { %p2956_p6 = scmp.ne.s32.totalorder (!%p2955_p13), %s2945_s25, 0 }
  0xaa   : > { %2407 = dma.done.wait (%p2956_p6), %s525_s5, 1024  }
  0xab   : > { %2409 = vsyncadd (%p2956_p6), %s525_s5, 4294966272  ;;  %p2957_p11 = scmp.eq.s32.totalorder %s2567_s19, 0 }
  0xad   : > { %2411 = dma.done.wait (%p2957_p11), [#allocation6], 3072   ;;  %p2958_p10 = pmov %p2957_p11 }
  0xaf   : > { %2413 = vsyncadd (%p2958_p10), [#allocation6], 4294964224  ;;  %p2959_p8 = pmov %p2958_p10 }
  0xb1   : > { %2415 = dma.done.wait (%p2959_p8), [#allocation9], 1024   ;;  %p2960_p9 = pmov %p2959_p8 }
  0xb2   : > { %s1682_s20 = sshll.u32 %s2778_s0, 5 }
  0xb3   : > { %2417 = vsyncadd (%p2960_p9), [#allocation9], 4294966272  ;;  %s2798_s27 = scalar_lea.vmem [#allocation10], %s1682_s20 }
  0xb4   : > { %2419 = dma.done.wait (%p2956_p6), %s525_s5, 512  }
  0xb5   : > { %2421 = vsyncadd (%p2956_p6), %s525_s5, 4294966784  ;;  %p2961_p0 = pmov %p2959_p8 }
  0xb7   : > { %2423 = dma.done.wait (%p2961_p0), [#allocation6], 1024   ;;  %p2962_p5 = pmov %p2961_p0 }
  0xb8   : > { %p2963_p12 = pmov %p2961_p0 }
  0xb9   : > { %2425 = vsyncadd (%p2962_p5), [#allocation6], 4294966272 }
  0xba   : > { %2427 = dma.done.wait (%p2963_p12), [#allocation9], 1024   ;;  %p2964_p4 = pmov %p2961_p0 }
  0xbb   : > { %p2965_p2 = pmov %p2961_p0 }
  0xbc   : > { %2429 = vsyncadd (%p2964_p4), [#allocation9], 4294966272 }
  0xbd   : > { %2431 = dma.done.wait (%p2965_p2), [#allocation14], 1024   ;;  %p2966_p1 = pmov %p2961_p0 }
  0xbe   : > { %v2064_v0 = vld [vmem:[#allocation5 + $0x78] sm:$0xff]   ;;  %v2066_v2 = vld [vmem:[#allocation5 + $0x70] sm:$0xff]   ;;  %v2068_v4 = vld [vmem:[#allocation5 + $0x68] sm:$0xff]   ;;  %s610_s28 = scalar_lea.vmem [#allocation15], %s1682_s20  ;;  %s2967_s5 = sld [smem:[#allocation28_spill]] }
  0xbf   : > { %2433 = vsyncadd (%p2966_p1), [#allocation14], 4294966272  ;;  %v2065_v1 = vld [vmem:[#allocation5 + $0x38] sm:$0xff]   ;;  %1766 = vmatprep.subr.bf16.mxu0 %v2064_v0  ;;  %v2067_v3 = vld [vmem:[#allocation5 + $0x30] sm:$0xff]   ;;  %s2968_s22 = sld [smem:[#allocation34_spill]]  ;;  %s2468_s1 = smov [#allocation15]  }
  0xc0   : > { %1767 = vmatpush3.bf16.msra.mxu0 %v2065_v1  ;;  %v2069_v5 = vld [vmem:[#allocation5 + $0x28] sm:$0xff]   ;;  %v2070_v6 = vld [vmem:[#allocation5 + $0x60] sm:$0xff]   ;;  %v2072_v8 = vld [vmem:[#allocation5 + $0x58] sm:$0xff]   ;;  %s2368_s15 = sshll.u32 %s2468_s1, 4  ;;  %s2369_s15 = int_to_ptr.vmem [resolvable:$false] %s2368_s15 }
  0xc1   : > { %1768 = vmatprep.subr.bf16.mxu0 %v2066_v2  ;;  %v2071_v7 = vld [vmem:[#allocation5 + $0x20] sm:$0xff]   ;;  %v2073_v9 = vld [vmem:[#allocation5 + $0x18] sm:$0xff]   ;;  %v2074_v10 = vld [vmem:[#allocation5 + $0x50] sm:$0xff]   ;;  %s2370_s14 = scalar_lea.vmem %s2369_s15, 1024 }
  0xc2   : > { %v616_v11 = vld [vmem:[%s2781_s29 + $0x8] sm:$0xff]  ;;  %v618_v12 = vld [vmem:[%s2781_s29 + $0x18] sm:$0xff]  ;;  %v2075_v14 = vld [vmem:[#allocation5 + $0x10] sm:$0xff]  }
  0xc3   : > { %v624_v13 = vpack.c.bf16 %v618_v12, %v616_v11  ;;  %v2076_v15 = vld [vmem:[#allocation5 + $0x48] sm:$0xff]   ;;  %v2080_v16 = vld [vmem:[#allocation7 + $0x38] sm:$0xff]   ;;  %v2081_v17 = vld [vmem:[#allocation7 + $0x30] sm:$0xff]  }
  0xc4   : > { %1769 = vmatpush3.bf16.msra.mxu0 %v2067_v3  ;;  %v2077_v18 = vld [vmem:[#allocation5 + $0x8] sm:$0xff]   ;;  %1844 = vmatprep.subr.bf16.mxu1 %v2080_v16  ;;  %v2078_v20 = vld [vmem:[#allocation5 + $0x40] sm:$0xff]   ;;  %v617_v23 = vld [vmem:[%s2781_s29 + $0x10] sm:$0xff]  ;;  %p2969_p3 = scmp.ne.s32.totalorder %s2967_s5, 0 }
  0xc5   : > { %1770 = vmatprep.subr.bf16.mxu0 %v2068_v4  ;;  %794 = vmatprep.mubr.bf16.mxu0 %v624_v13  ;;  %v2082_v19 = vld [vmem:[#allocation7 + $0x28] sm:$0xff]   ;;  %v2079_v21 = vld [vmem:[#allocation5] sm:$0xff]   ;;  %v622_v25 = vld [vmem:[%s2781_s29 + $0x38] sm:$0xff] }
  0xc6   : > { %1845 = vmatpush3.bf16.msra.mxu1 %v2080_v16  ;;  %v615_v22 = vld [vmem:[%s2781_s29] sm:$0xff]  ;;  %v620_v24 = vld [vmem:[%s2781_s29 + $0x28] sm:$0xff]  ;;  %v621_v29 = vld [vmem:[%s2781_s29 + $0x30] sm:$0xff] }
  0xc7   : > { %1846 = vmatprep.subr.bf16.mxu1 %v2081_v17  ;;  %v623_v26 = vpack.c.bf16 %v617_v23, %v615_v22  ;;  %v626_v27 = vpack.c.bf16 %v622_v25, %v620_v24  ;;  %v619_v28 = vld [vmem:[%s2781_s29 + $0x20] sm:$0xff]  ;;  %v2084_v32 = vld [vmem:[#allocation7 + $0x18] sm:$0xff]   ;;  %v2085_v33 = vld [vmem:[#allocation7 + $0x10] sm:$0xff]   ;;  %s1765_s29 = sshll.u32 %s2567_s19, 9  ;;  %s1498_s19 = scalar_lea.sflag [#allocation4], %s2778_s0 }
  0xc8   : > { %1771 = vmatpush3.bf16.msra.mxu0 %v2069_v5  ;;  %v625_v30 = vpack.c.bf16 %v621_v29, %v619_v28  ;;  %v2083_v31 = vld [vmem:[#allocation7 + $0x20] sm:$0xff]   ;;  %v2086_v34 = vld [vmem:[#allocation7 + $0x8] sm:$0xff]   ;;  %v2088_v36 = vld [vmem:[#allocation11 + $0x38] sm:$0xff]   ;;  %s2852_s17 = scalar_lea.hbm %s2968_s22, %s1765_s29 }
  0xc9   : > { %1772 = vmatprep.subr.bf16.mxu0 %v2070_v6  ;;  %v2087_v35 = vld [vmem:[#allocation7] sm:$0xff]   ;;  %v2096_v37 = vld [vmem:[#allocation8 + $0x38] sm:$0xff]   ;;  %v2097_v38 = vld [vmem:[#allocation8 + $0x30] sm:$0xff]  }
  0xca   : > { %1847 = vmatpush3.bf16.msra.mxu1 %v2081_v17  ;;  %v2098_v39 = vld [vmem:[#allocation8 + $0x28] sm:$0xff]   ;;  %v2099_v40 = vld [vmem:[#allocation8 + $0x20] sm:$0xff]   ;;  %v2100_v41 = vld [vmem:[#allocation8 + $0x18] sm:$0xff]  }
  0xcb   : > { %1848 = vmatprep.subr.bf16.mxu1 %v2082_v19  ;;  %v1687_v46 = vld [vmem:[%s2899_s2] ss:$0 sm:$0xff]  ;;  %v1088_v63 = vld [vmem:[%s2798_s27 + $0x8] sm:$0xff]  ;;  %v2089_v4 = vld [vmem:[#allocation11 + $0x30] sm:$0xff]  }
  0xcc   : > { %1773 = vmatpush3.bf16.msra.mxu0 %v2071_v7  ;;  %v1087_v62 = vld [vmem:[%s2798_s27] sm:$0xff]  ;;  %v2090_v5 = vld [vmem:[#allocation11 + $0x28] sm:$0xff]   ;;  %v2092_v7 = vld [vmem:[#allocation11 + $0x18] sm:$0xff]  }
  0xcd   : > { %1774 = vmatprep.subr.bf16.mxu0 %v2072_v8  ;;  %v1091_v2 = vpack.c.bf16 %v1088_v63, %v1087_v62  ;;  %v2091_v6 = vld [vmem:[#allocation11 + $0x20] sm:$0xff]   ;;  %v2093_v8 = vld [vmem:[#allocation11 + $0x10] sm:$0xff]   ;;  %v1090_v12 = vld [vmem:[%s2798_s27 + $0x18] sm:$0xff] }
  0xce   : > { %1849 = vmatpush3.bf16.msra.mxu1 %v2082_v19  ;;  %v1089_v11 = vld [vmem:[%s2798_s27 + $0x10] sm:$0xff]  ;;  %v2103_v16 = vld [vmem:[#allocation8] sm:$0xff]   ;;  %v2104_v17 = vld [vmem:[#allocation12 + $0x38] sm:$0xff]   ;;  %s1511_s27 = sshll.u32 %s610_s28, 4  ;;  %s2854_s27 = int_to_ptr.vmem [resolvable:$true] %s1511_s27 }
  0xcf   : > { %1850 = vmatprep.subr.bf16.mxu1 %v2083_v31  ;;  %v1092_v13 = vpack.c.bf16 %v1090_v12, %v1089_v11  ;;  %v2119_v62 = vld [vmem:[#allocation13] sm:$0xff]   ;;  %s2364_s20 = scalar_lea.vmem %s2854_s27, 512  ;;  %p2371_p11 = scmp.lt.s32.totalorder %s2854_s27, %s2369_s15 }
  0xd0   : > { %1775 = vmatpush3.bf16.msra.mxu0 %v2073_v9  ;;  %v2094_v9 = vld [vmem:[#allocation11 + $0x8] sm:$0xff]   ;;  %p2365_p7 = scmp.ne.s32.totalorder %s2854_s27, %s2364_s20  ;;  %p2372_p10 = scmp.lt.s32.totalorder %s2370_s14, %s2364_s20 }
  0xd1   : > { %1776 = vmatprep.subr.bf16.mxu0 %v2074_v10  ;;  %v2095_v10 = vld [vmem:[#allocation11] sm:$0xff]  }
  0xd2   : > { %1851 = vmatpush3.bf16.msra.mxu1 %v2083_v31  ;;  %p2366_p13 = pnand %p2365_p7, %p2969_p3  ;;  %p2373_p8 = por %p2372_p10, %p2371_p11 }
  0xd3   : > { %1852 = vmatprep.subr.bf16.mxu1 %v2084_v32 }
  0xd4   : > { %1777 = vmatpush3.bf16.msra.mxu0 %v2075_v14  ;;  %v2101_v14 = vld [vmem:[#allocation8 + $0x10] sm:$0xff]   ;;  %p2367_p6 = pneg %p2366_p13 }
  0xd5   : > { %1778 = vmatprep.subr.bf16.mxu0 %v2076_v15  ;;  %v2102_v15 = vld [vmem:[#allocation8 + $0x8] sm:$0xff]  }
  0xd6   : > { %1853 = vmatpush3.bf16.msra.mxu1 %v2084_v32  ;;  %p2374_p9 = pnand %p2373_p8, %p2367_p6 }
  0xd7   : > { %1854 = vmatprep.subr.bf16.mxu1 %v2085_v33 }
  0xd8   : > { %1779 = vmatpush3.bf16.msra.mxu0 %v2077_v18 }
  0xd9   : > { %1780 = vmatprep.subr.bf16.mxu0 %v2078_v20  ;;  %v1704_v20 = vld [vmem:[%s2901_s4] ss:$0 sm:$0xff] }
  0xda   : > { %1855 = vmatpush3.bf16.msra.mxu1 %v2085_v33  ;;  %v2105_v33 = vld [vmem:[#allocation12 + $0x30] sm:$0xff]  }
  0xdb   : > { %1856 = vmatprep.subr.bf16.mxu1 %v2086_v34 }
  0xdc   : > { %1781 = vmatpush3.bf16.msra.mxu0 %v2079_v21 }
  0xdd   : > { %1864 = vmatprep.subr.bf16.mxu0 %v2096_v37 }
  0xde   : > { %1857 = vmatpush3.bf16.msra.mxu1 %v2086_v34  ;;  %v2106_v34 = vld [vmem:[#allocation12 + $0x28] sm:$0xff]  }
  0xdf   : > { %795 = vmatmul.mubr.bf16.vlgmr.msra.gmra.mxu0 %v623_v26  ;;  %1858 = vmatprep.subr.bf16.mxu1 %v2087_v35 }
  0xe0   : > { %802 = vmatprep.mubr.bf16.mxu0 %v626_v27  ;;  %1865 = vmatpush3.bf16.msra.mxu0 %v2096_v37  ;;  %v2109_v37 = vld [vmem:[#allocation12 + $0x10] sm:$0xff]  }
  0xe1   : > { %1866 = vmatprep.subr.bf16.mxu0 %v2097_v38 }
  0xe2   : > { %1859 = vmatpush3.bf16.msra.mxu1 %v2087_v35  ;;  %v2107_v35 = vld [vmem:[#allocation12 + $0x20] sm:$0xff]  }
  0xe3   : > { %1884 = vmatprep.subr.bf16.mxu1 %v2088_v36 }
  0xe4   : > { %1867 = vmatpush3.bf16.msra.mxu0 %v2097_v38 }
  0xe5   : > { %1868 = vmatprep.subr.bf16.mxu0 %v2098_v39 }
  0xe7   : > { %803 = vmatmul.mubr.bf16.gmra.mxu0 %v625_v30 }
  0xe8   : > { %1869 = vmatpush3.bf16.msra.mxu0 %v2098_v39  ;;  %v2110_v39 = vld [vmem:[#allocation12 + $0x8] sm:$0xff]  }
  0xe9   : > { %1870 = vmatprep.subr.bf16.mxu0 %v2099_v40 }
  0xec   : > { %1871 = vmatpush3.bf16.msra.mxu0 %v2099_v40 }
  0xed   : > { %1872 = vmatprep.subr.bf16.mxu0 %v2100_v41 }
  0xf0   : > { %1873 = vmatpush3.bf16.msra.mxu0 %v2100_v41  ;;  %v1726_v41 = vld [vmem:[%s2906_s9] ss:$0 sm:$0xff] }
  0xf1   : > { %1874 = vmatprep.subr.bf16.mxu0 %v2101_v14 }
  0xf4   : > { %1875 = vmatpush3.bf16.msra.mxu0 %v2101_v14 }
  0xf5   : > { %1876 = vmatprep.subr.bf16.mxu0 %v2102_v15 }
  0xf8   : > { %1877 = vmatpush3.bf16.msra.mxu0 %v2102_v15 }
  0xf9   : > { %1878 = vmatprep.subr.bf16.mxu0 %v2103_v16 }
  0xfc   : > { %1879 = vmatpush3.bf16.msra.mxu0 %v2103_v16 }
  0xfd   : > { %1904 = vmatprep.subr.bf16.mxu0 %v2104_v17 }
 0x19f   : > { %v1782_v42 = vpop.f32.mrf.mxu0 }
 0x1a1   : > { %v1783_v43 = vpop.f32.mrf.mxu0 }
 0x1a2   : > { %v1784_v44 = vadd.f32 %v1783_v43, %v1782_v42  ;;  %v2111_v43 = vld [vmem:[#allocation12] sm:$0xff]  }
 0x1a3   : > { %v1785_v45 = vpop.f32.mrf.mxu0 }
 0x1a4   : > { %v797_v49 = vadd.f32 %v1784_v44, %v1687_v46 }
 0x1a5   : > { %v1786_v47 = vpop.f32.mrf.mxu0 }
 0x1a6   : > { %v1787_v48 = vadd.f32 %v1786_v47, %v1785_v45  ;;  %v811_v54 = vmax.f32 %v797_v49, 0.0 }
 0x1a7   : > { %v1788_v50 = vpop.f32.mrf.mxu0 }
 0x1a8   : > { %v800_v51 = vadd.f32 %v1787_v48, %v1687_v46 }
 0x1a9   : > { %v1789_v52 = vpop.f32.mrf.mxu0 }
 0x1aa   : > { %v1790_v53 = vadd.f32 %v1789_v52, %v1788_v50  ;;  %v812_v55 = vmax.f32 %v800_v51, 0.0 }
 0x1ab   : > { %v1791_v56 = vpop.f32.mrf.mxu0 }
 0x1ac   : > { %v815_v57 = vpack.c.bf16 %v812_v55, %v811_v54  ;;  %v805_v59 = vadd.f32 %v1790_v53, %v1687_v46  ;;  %v2112_v55 = vld [vmem:[#allocation13 + $0x38] sm:$0xff]  }
 0x1ad   : > { %v1792_v58 = vpop.f32.mrf.mxu0 }
 0x1ae   : > { %v1793_v60 = vadd.f32 %v1792_v58, %v1791_v56  ;;  %1860 = vmatprep.mubr.bf16.mxu1 %v815_v57  ;;  %v813_v0 = vmax.f32 %v805_v59, 0.0  ;;  %v2113_v56 = vld [vmem:[#allocation13 + $0x30] sm:$0xff]   ;;  %v2114_v57 = vld [vmem:[#allocation13 + $0x28] sm:$0xff]   ;;  %v2115_v58 = vld [vmem:[#allocation13 + $0x20] sm:$0xff]  }
 0x1af   : > { %v2116_v59 = vld [vmem:[#allocation13 + $0x18] sm:$0xff]  }
 0x1b0   : > { %v808_v61 = vadd.f32 %v1793_v60, %v1687_v46  ;;  %v2117_v60 = vld [vmem:[#allocation13 + $0x10] sm:$0xff]  }
 0x1b2   : > { %v814_v1 = vmax.f32 %v808_v61, 0.0  ;;  %v2118_v61 = vld [vmem:[#allocation13 + $0x8] sm:$0xff]  }
 0x1b4   : > { %v816_v3 = vpack.c.bf16 %v814_v1, %v813_v0 }
 0x1b6   : > { %1861 = vmatmul.mubr.bf16.vlgmr.msra.gmra.mxu1 %v816_v3 }
 0x1b7   : > { %1885 = vmatpush3.bf16.msra.mxu1 %v2088_v36  ;;  %1900 = vmatprep.mubr.bf16.mxu1 %v1091_v2  ;;  %v2108_v36 = vld [vmem:[#allocation12 + $0x18] sm:$0xff]  }
 0x1b8   : > { %1886 = vmatprep.subr.bf16.mxu1 %v2089_v4 }
 0x1bb   : > { %1887 = vmatpush3.bf16.msra.mxu1 %v2089_v4 }
 0x1bc   : > { %1888 = vmatprep.subr.bf16.mxu1 %v2090_v5 }
 0x1bf   : > { %1889 = vmatpush3.bf16.msra.mxu1 %v2090_v5  ;;  %v1735_v5 = vld [vmem:[%s2908_s11] ss:$0 sm:$0xff] }
 0x1c0   : > { %1890 = vmatprep.subr.bf16.mxu1 %v2091_v6 }
 0x1c3   : > { %1891 = vmatpush3.bf16.msra.mxu1 %v2091_v6 }
 0x1c4   : > { %1892 = vmatprep.subr.bf16.mxu1 %v2092_v7 }
 0x1c7   : > { %1893 = vmatpush3.bf16.msra.mxu1 %v2092_v7 }
 0x1c8   : > { %1894 = vmatprep.subr.bf16.mxu1 %v2093_v8 }
 0x1cb   : > { %1895 = vmatpush3.bf16.msra.mxu1 %v2093_v8 }
 0x1cc   : > { %1896 = vmatprep.subr.bf16.mxu1 %v2094_v9 }
 0x1cf   : > { %1897 = vmatpush3.bf16.msra.mxu1 %v2094_v9 }
 0x1d0   : > { %1898 = vmatprep.subr.bf16.mxu1 %v2095_v10 }
 0x1d3   : > { %1899 = vmatpush3.bf16.msra.mxu1 %v2095_v10 }
 0x1d4   : > { %1924 = vmatprep.subr.bf16.mxu1 %v2112_v55 }
 0x1d6   : > { %1901 = vmatmul.mubr.bf16.vlgmr.msra.gmra.mxu1 %v1092_v13 }
 0x1d7   : > { %1925 = vmatpush3.bf16.msra.mxu1 %v2112_v55 }
 0x1d8   : > { %1926 = vmatprep.subr.bf16.mxu1 %v2113_v56 }
 0x1db   : > { %1927 = vmatpush3.bf16.msra.mxu1 %v2113_v56 }
 0x1dc   : > { %1928 = vmatprep.subr.bf16.mxu1 %v2114_v57 }
 0x1df   : > { %1929 = vmatpush3.bf16.msra.mxu1 %v2114_v57 }
 0x1e0   : > { %1930 = vmatprep.subr.bf16.mxu1 %v2115_v58 }
 0x1e3   : > { %1931 = vmatpush3.bf16.msra.mxu1 %v2115_v58 }
 0x1e4   : > { %1932 = vmatprep.subr.bf16.mxu1 %v2116_v59 }
 0x1e7   : > { %1933 = vmatpush3.bf16.msra.mxu1 %v2116_v59 }
 0x1e8   : > { %1934 = vmatprep.subr.bf16.mxu1 %v2117_v60 }
 0x1eb   : > { %1935 = vmatpush3.bf16.msra.mxu1 %v2117_v60 }
 0x1ec   : > { %1936 = vmatprep.subr.bf16.mxu1 %v2118_v61 }
 0x1ef   : > { %1937 = vmatpush3.bf16.msra.mxu1 %v2118_v61 }
 0x1f0   : > { %1938 = vmatprep.subr.bf16.mxu1 %v2119_v62 }
 0x1f3   : > { %1939 = vmatpush3.bf16.msra.mxu1 %v2119_v62 }
 0x276   : > { %v1862_v18 = vpop.f32.mrf.mxu1 }
 0x277   : > { %v931_v24 = vadd.f32 %v1862_v18, %v1704_v20  ;;  %v1713_v18 = vld [vmem:[%s2903_s6] ss:$0 sm:$0xff] }
 0x278   : > { %v922_v19 = vpop.f32.mrf.mxu1 }
 0x279   : > { %v923_v22 = vadd.f32 %v1704_v20, %v922_v19  ;;  %v939_v30 = vmax.f32 %v931_v24, 0.0 }
 0x27a   : > { %v1863_v21 = vpop.f32.mrf.mxu1 }
 0x27b   : > { %v934_v23 = vadd.f32 %v1863_v21, %v1704_v20  ;;  %v937_v28 = vmax.f32 %v923_v22, 0.0 }
 0x27c   : > { %v925_v25 = vpop.f32.mrf.mxu1 }
 0x27d   : > { %v926_v26 = vadd.f32 %v1704_v20, %v925_v25  ;;  %v940_v27 = vmax.f32 %v934_v23, 0.0  ;;  %v1744_v25 = vld [vmem:[%s2910_s13] ss:$0 sm:$0xff] }
 0x27f   : > { %v938_v29 = vmax.f32 %v926_v26, 0.0  ;;  %v942_v32 = vpack.c.bf16 %v940_v27, %v939_v30 }
 0x281   : > { %v941_v31 = vpack.c.bf16 %v938_v29, %v937_v28 }
 0x283   : > { %1880 = vmatprep.mubr.bf16.mxu0 %v941_v31 }
 0x284   : > { %1881 = vmatmul.mubr.bf16.vlgmr.msra.gmra.mxu0 %v942_v32 }
 0x285   : > { %1905 = vmatpush3.bf16.msra.mxu0 %v2104_v17 }
 0x286   : > { %1906 = vmatprep.subr.bf16.mxu0 %v2105_v33 }
 0x289   : > { %1907 = vmatpush3.bf16.msra.mxu0 %v2105_v33 }
 0x28a   : > { %1908 = vmatprep.subr.bf16.mxu0 %v2106_v34 }
 0x28d   : > { %1909 = vmatpush3.bf16.msra.mxu0 %v2106_v34 }
 0x28e   : > { %1910 = vmatprep.subr.bf16.mxu0 %v2107_v35 }
 0x291   : > { %1911 = vmatpush3.bf16.msra.mxu0 %v2107_v35 }
 0x292   : > { %1912 = vmatprep.subr.bf16.mxu0 %v2108_v36 }
 0x295   : > { %1913 = vmatpush3.bf16.msra.mxu0 %v2108_v36 }
 0x296   : > { %v1902_v38 = vpop.f32.mrf.mxu1  ;;  %1914 = vmatprep.subr.bf16.mxu0 %v2109_v37 }
 0x297   : > { %v1207_v46 = vadd.f32 %v1902_v38, %v1726_v41 }
 0x298   : > { %v1198_v40 = vpop.f32.mrf.mxu1 }
 0x299   : > { %1915 = vmatpush3.bf16.msra.mxu0 %v2109_v37  ;;  %v1199_v44 = vadd.f32 %v1726_v41, %v1198_v40  ;;  %v1215_v52 = vmax.f32 %v1207_v46, 0.0 }
 0x29a   : > { %v1903_v42 = vpop.f32.mrf.mxu1  ;;  %1916 = vmatprep.subr.bf16.mxu0 %v2110_v39 }
 0x29b   : > { %v1210_v45 = vadd.f32 %v1903_v42, %v1726_v41  ;;  %v1213_v50 = vmax.f32 %v1199_v44, 0.0 }
 0x29c   : > { %v1201_v47 = vpop.f32.mrf.mxu1 }
 0x29d   : > { %v1202_v48 = vadd.f32 %v1726_v41, %v1201_v47  ;;  %1917 = vmatpush3.bf16.msra.mxu0 %v2110_v39  ;;  %v1216_v49 = vmax.f32 %v1210_v45, 0.0 }
 0x29e   : > { %1918 = vmatprep.subr.bf16.mxu0 %v2111_v43 }
 0x29f   : > { %v1214_v51 = vmax.f32 %v1202_v48, 0.0  ;;  %v1218_v54 = vpack.c.bf16 %v1216_v49, %v1215_v52 }
 0x2a1   : > { %v1217_v53 = vpack.c.bf16 %v1214_v51, %v1213_v50  ;;  %1919 = vmatpush3.bf16.msra.mxu0 %v2111_v43 }
 0x2a3   : > { %1920 = vmatprep.mubr.bf16.mxu0 %v1217_v53 }
 0x2a4   : > { %1921 = vmatmul.mubr.bf16.vlgmr.msra.gmra.mxu0 %v1218_v54 }
 0x344   : > { %v1882_v63 = vpop.f32.mrf.mxu0 }
 0x345   : > { %v1057_v19 = vadd.f32 %v1882_v63, %v1713_v18 }
 0x346   : > { %v1048_v0 = vpop.f32.mrf.mxu0 }
 0x347   : > { %v1049_v20 = vadd.f32 %v1713_v18, %v1048_v0  ;;  %v1724_v21 = vmul.f32 -1.442695, %v1057_v19 }
 0x348   : > { %v1883_v1 = vpop.f32.mrf.mxu0 }
 0x349   : > { %v1060_v22 = vadd.f32 %v1883_v1, %v1713_v18  ;;  %v1722_v23 = vmul.f32 -1.442695, %v1049_v20  ;;  %2120 = vpow2.f32 %v1724_v21 }
 0x34a   : > { %v1051_v2 = vpop.f32.mrf.mxu0 }
 0x34b   : > { %v1052_v24 = vadd.f32 %v1713_v18, %v1051_v2  ;;  %v1725_v26 = vmul.f32 -1.442695, %v1060_v22  ;;  %2122 = vpow2.f32 %v1722_v23 }
 0x34d   : > { %v1723_v29 = vmul.f32 -1.442695, %v1052_v24  ;;  %2124 = vpow2.f32 %v1725_v26 }
 0x356   : > { %v2121_v40 = vpop.eup %2120 }
 0x357   : > { %v1077_v42 = vadd.f32 1.0, %v2121_v40 }
 0x358   : > { %v2123_v41 = vpop.eup %2122 }
 0x359   : > { %v1075_v45 = vadd.f32 1.0, %v2123_v41 }
 0x35a   : > { %v2125_v43 = vpop.eup %2124 }
 0x35b   : > { %v1078_v49 = vadd.f32 1.0, %v2125_v43 }
 0x364   : > { %v1922_v3 = vpop.f32.mrf.mxu0 }
 0x365   : > { %v1333_v9 = vadd.f32 %v1922_v3, %v1735_v5 }
 0x366   : > { %v1324_v4 = vpop.f32.mrf.mxu0 }
 0x367   : > { %v1325_v7 = vadd.f32 %v1735_v5, %v1324_v4  ;;  %v1341_v15 = vmax.f32 %v1333_v9, 0.0 }
 0x368   : > { %v1923_v6 = vpop.f32.mrf.mxu0 }
 0x369   : > { %v1336_v8 = vadd.f32 %v1923_v6, %v1735_v5  ;;  %v1339_v13 = vmax.f32 %v1325_v7, 0.0 }
 0x36a   : > { %v1327_v10 = vpop.f32.mrf.mxu0 }
 0x36b   : > { %v1328_v11 = vadd.f32 %v1735_v5, %v1327_v10  ;;  %v1342_v12 = vmax.f32 %v1336_v8, 0.0 }
 0x36d   : > { %v1340_v14 = vmax.f32 %v1328_v11, 0.0  ;;  %v1344_v17 = vpack.c.bf16 %v1342_v12, %v1341_v15 }
 0x36f   : > { %v1343_v16 = vpack.c.bf16 %v1340_v14, %v1339_v13 }
 0x371   : > { %1940 = vmatprep.mubr.bf16.mxu1 %v1343_v16 }
 0x372   : > { %1941 = vmatmul.mubr.bf16.vlgmr.msra.gmra.mxu1 %v1344_v17 }
 0x432   : > { %v1942_v27 = vpop.f32.mrf.mxu1 }
 0x433   : > { %v1459_v28 = vadd.f32 %v1942_v27, %v1744_v25 }
 0x434   : > { %v1450_v30 = vpop.f32.mrf.mxu1 }
 0x435   : > { %v1755_v31 = vmul.f32 -1.442695, %v1459_v28  ;;  %v1451_v32 = vadd.f32 %v1744_v25, %v1450_v30 }
 0x436   : > { %v1943_v33 = vpop.f32.mrf.mxu1 }
 0x437   : > { %2126 = vpow2.f32 %v1755_v31  ;;  %v1753_v34 = vmul.f32 -1.442695, %v1451_v32  ;;  %v1462_v35 = vadd.f32 %v1943_v33, %v1744_v25 }
 0x438   : > { %2128 = vpow2.f32 %v1723_v29  ;;  %v1453_v36 = vpop.f32.mrf.mxu1 }
 0x439   : > { %2130 = vpow2.f32 %v1753_v34  ;;  %v1756_v37 = vmul.f32 -1.442695, %v1462_v35  ;;  %v1454_v38 = vadd.f32 %v1744_v25, %v1453_v36 }
 0x43b   : > { %2132 = vpow2.f32 %v1756_v37  ;;  %v1754_v39 = vmul.f32 -1.442695, %v1454_v38 }
 0x43d   : > { %2134 = vpow2.f32 %v1754_v39 }
 0x43e   : > { %2136 = vrcp.f32 %v1077_v42 }
 0x444   : > { %v2127_v44 = vpop.eup %2126 }
 0x445   : > { %v2129_v46 = vpop.eup %2128  ;;  %v1479_v47 = vadd.f32 1.0, %v2127_v44 }
 0x446   : > { %v2131_v48 = vpop.eup %2130  ;;  %v1076_v52 = vadd.f32 1.0, %v2129_v46 }
 0x447   : > { %2138 = vrcp.f32 %v1479_v47  ;;  %v1477_v50 = vadd.f32 1.0, %v2131_v48 }
 0x448   : > { %v2133_v51 = vpop.eup %2132  ;;  %2140 = vrcp.f32 %v1075_v45 }
 0x449   : > { %2142 = vrcp.f32 %v1477_v50  ;;  %v1480_v53 = vadd.f32 1.0, %v2133_v51 }
 0x44a   : > { %v2135_v54 = vpop.eup %2134  ;;  %2144 = vrcp.f32 %v1078_v49 }
 0x44b   : > { %2146 = vrcp.f32 %v1480_v53  ;;  %v1478_v55 = vadd.f32 1.0, %v2135_v54  ;;  %v2137_v56 = vpop.eup %2136 }
 0x44c   : > { %2148 = vrcp.f32 %v1076_v52 }
 0x44d   : > { %2150 = vrcp.f32 %v1478_v55 }
 0x454   : > { %v2139_v57 = vpop.eup %2138 }
 0x455   : > { %v2141_v58 = vpop.eup %2140  ;;  %v1491_v59 = vmul.f32 %v2139_v57, %v2137_v56 }
 0x456   : > { %v2143_v60 = vpop.eup %2142 }
 0x457   : > { %v2145_v61 = vpop.eup %2144  ;;  %1495 = vst [vmem:[%s610_s28 + $0x10] sm:$0xff] %v1491_v59  ;;  %v1489_v62 = vmul.f32 %v2143_v60, %v2141_v58 }
 0x458   : > { %v2147_v63 = vpop.eup %2146 }
 0x459   : > { %v2149_v0 = vpop.eup %2148  ;;  %1493 = vst [vmem:[%s610_s28] sm:$0xff] %v1489_v62  ;;  %v1492_v1 = vmul.f32 %v2147_v63, %v2145_v61 }
 0x45a   : > { %v2151_v2 = vpop.eup %2150 }
 0x45b   : > { %1496 = vst [vmem:[%s610_s28 + $0x18] sm:$0xff] %v1492_v1  ;;  %v1490_v3 = vmul.f32 %v2151_v2, %v2149_v0 }
 0x45d   : > { %1494 = vst [vmem:[%s610_s28 + $0x8] sm:$0xff] %v1490_v3 }
 0x45e   : > { %2377 = shalt.err (!%p2374_p9)
}
 0x45f   : > { %s2378_s21 = scalar_lea.hbm %s2852_s17, 512  ;;  %s2382_s26 = scalar_lea.hbm %s2968_s22, 1024 }
 0x460   : > { %p2379_p0 = scmp.ne.s32.totalorder %s2852_s17, %s2378_s21  ;;  %p2383_p4 = scmp.lt.s32.totalorder %s2852_s17, %s2968_s22 }
 0x461   : > { %p2384_p2 = scmp.lt.s32.totalorder %s2382_s26, %s2378_s21 }
 0x462   : > { %p2380_p5 = pnand %p2379_p0, %p2969_p3 }
 0x463   : > { %p2385_p1 = por %p2384_p2, %p2383_p4 }
 0x464   : > { %p2381_p12 = pneg %p2380_p5 }
 0x466   : > { %p2386_p7 = pnand %p2385_p1, %p2381_p12 }
 0x468   : > { %2389 = shalt.err (!%p2386_p7)
}
 0x469   : > { %s2469_s29 = smov 128   ;;  %s2470_s25 = smov 8  }
 0x46a   : > { %1972 = dma.vmem_to_hbm [thread:$0]  (%p2969_p3), %s2854_s27, 512, %s2852_s17, %s1498_s19, %s2469_s29, %s2469_s29, %s2470_s25  }
 0x46b PF: > { %s2970_s18 = sld [smem:[#allocation24_spill]]  ;;  %p2973_p6 = scmp.ge.s32.totalorder %s2452_s16, 2 }
 0x46c   : > { %s2971_s20 = sld [smem:[#allocation29_spill]] }
 0x471   : > { %s1526_s1 = sand.u32 1, %s2970_s18  }
 0x472   : > { %p2972_p13 = scmp.ne.s32.totalorder %s2971_s20, 0  ;;  %s1527_s15 = scalar_lea.sflag [#allocation4], %s1526_s1 }
 0x474   : > { %p2001_p11 = pnand %p2973_p6, %p2972_p13 }
 0x476   : > { %p2002_p10 = pneg %p2001_p11 }
 0x478   : > { %2435 = dma.done.wait (%p2002_p10), %s1527_s15, 512  }
 0x479   : > { %2437 = vsyncadd (%p2002_p10), %s1527_s15, 4294966784  ;;  %s2974_s16 = sld [smem:[#allocation26_spill]]  ;;  %s2977_s29 = smov %s2444_s30 }
 0x47a   : > { %s2975_s14 = sld [smem:[#allocation25_spill]] }
 0x47b   : > { %s2976_s15 = sld [smem:[#allocation27_spill]] }
 0x47f   : > { %p30_p8 = scmp.ge.s32.totalorder %s2974_s16, 4  }
 0x480   : > { %s2978_s30 = smov %s2975_s14 }
 0x481   :  { %32 = sbr.rel (!%p30_p8) target bundleno = 14 (0xe), region = 156 }
 0x486   :  { %1532 = vsyncpa [#allocation3], 1 }
 0x487   :  { %1534 = vsyncpa [#allocation3 + $0x1], 1 }
 0x488   :  { %1535 = vsyncpa [#allocation6], 1 }
 0x489   :  { %1536 = vsyncpa [#allocation9], 1 }
 0x48a   :  { %1537 = vsyncpa [#allocation14], 1 }
 0x48b   :  { %1538 = vsyncpa [#allocation4], 1 }
 0x48c   :  { %1540 = vsyncpa [#allocation4 + $0x1], 1 }

</bundles_post_ra>
